<compile_context>
chip_gen: v7x
topology: tpu7x:2x2x1
jax: 0.10.0
libtpu: 0.0.40
codegen_flags: <defaults>
</compile_context>

<pallas_src>
import jax
import jax.numpy as jnp
from jax.experimental import pallas as pl
from jax.experimental.pallas import tpu as pltpu


def _kernel_single(x_ref, w_ref, o_ref):
    # x_ref: (tm, K) activation tile; w_ref: (K, td) bf16 folded weight; o_ref: (tm, td)
    o_ref[...] = jnp.dot(
        x_ref[...].astype(jnp.bfloat16),
        w_ref[...],
        preferred_element_type=jnp.float32,
    ).astype(o_ref.dtype)


def _kernel_ksplit(x_ref, w_ref, o_ref, acc_ref):
    # Same matmul, but with a K-reduction grid axis (innermost, "arbitrary").
    @pl.when(pl.program_id(2) == 0)
    def _():
        acc_ref[...] = jnp.zeros_like(acc_ref)

    acc_ref[...] += jnp.dot(
        x_ref[...].astype(jnp.bfloat16),
        w_ref[...],
        preferred_element_type=jnp.float32,
    )

    @pl.when(pl.program_id(2) == pl.num_programs(2) - 1)
    def _():
        o_ref[...] = acc_ref[...].astype(o_ref.dtype)


def _vmem_budget():
    """Returns (tiling budget bytes, vmem_limit_bytes) per TPU generation."""
    cap = None
    try:
        cap = getattr(pltpu.get_tpu_info(), "vmem_capacity_bytes", None)
    except Exception:
        cap = None
    if cap is not None and cap >= 100 * 1024 * 1024:
        # v5e / v6e: 128 MiB physical VMEM -> large tiles amortize per-step overhead.
        return 80 * 1024 * 1024, 100 * 1024 * 1024
    # v7x (64 MiB shared by 2 TCs) or unknown: stay conservative.
    return 24 * 1024 * 1024, 32 * 1024 * 1024


def discriminative_basis(x, basis_weight, linear_weight):
    """Forward of DiscriminativeBasis.

    x:             (N, C, 4, 4)
    basis_weight:  (C, 1, 4, 4)  -- depthwise Conv2d weight (groups=C)
    linear_weight: (D_out, C)    -- torch Linear weight (no bias)
    returns:       (N, D_out)    -- dtype follows x.dtype
    """
    N, C, H, W = x.shape
    assert (H, W) == (4, 4), "DiscriminativeBasis expects 4x4 spatial input"
    D_out = linear_weight.shape[0]
    K = C * H * W

    # Fold the depthwise 4x4 conv into the linear weight (tiny K x D, done once in f32).
    weff = (
        basis_weight.reshape(C, H * W).astype(jnp.float32)[:, :, None]
        * linear_weight.astype(jnp.float32).T[:, None, :]
    ).reshape(K, D_out)

    # Lane-dense output: pad D_out up to a multiple of 128 (avoids masked vst.msk stores
    # and degenerate MXU shapes for tiny discriminator heads). Sliced back at the end.
    D_pad = max(128, ((D_out + 127) // 128) * 128)
    if D_pad != D_out:
        weff = jnp.pad(weff, ((0, 0), (0, D_pad - D_out)))
    weff = weff.astype(jnp.bfloat16)  # halve weight HBM traffic, feed MXU bf16

    # Free reshape: NCHW is channel-major / spatial-minor == .view(N, -1).
    x_flat = x.reshape(N, K)
    out_dtype = x.dtype
    x_item = jnp.dtype(x.dtype).itemsize
    w_item = 2  # bf16 weff
    o_item = jnp.dtype(out_dtype).itemsize

    budget, vmem_limit = _vmem_budget()

    # ---- td: output-lane tile, K-aware so the resident weight strip fits ------------
    td = D_pad if D_pad <= 512 else 512
    for cand in (td, 256, 128):
        if cand > D_pad:
            continue
        td = cand
        if 2 * K * td * w_item <= budget // 2:
            break

    # ---- K split only if even a (K, 128) weight strip is too big --------------------
    tk, nk = K, 1
    if 2 * K * td * w_item > budget // 2 and K % 128 == 0:
        chunks = max(1, (budget // 2) // (2 * 128 * td * w_item))
        tk = min(128 * chunks, K)
        while K % tk != 0:  # snap to a multiple-of-128 divisor of K
            tk -= 128
        tk = max(tk, 128)
        nk = K // tk

    # ---- tm: batch tile (largest 128/256-aligned block that fits the budget) --------
    def fits(tm):
        tot = 2 * tm * tk * x_item + 2 * tk * td * w_item + 2 * tm * td * o_item
        if nk > 1:
            tot += tm * td * 4  # f32 accumulator scratch
        return tot <= budget

    tm = 16
    for cand in (1024, 512, 256, 128, 64, 32, 16):
        if fits(cand):
            tm = cand
            break
    if N <= tm:
        tm = N  # a full-extent block is always legal

    nj = pl.cdiv(D_pad, td)
    ni = pl.cdiv(N, tm)

    # v7x megacore guard: make sure at least one parallel axis has >= 2 blocks.
    if ni == 1 and nj == 1 and N >= 32:
        tm = max(16, (tm // 2) // 8 * 8)
        ni = pl.cdiv(N, tm)

    cost = pl.CostEstimate(
        flops=2 * N * K * D_pad,
        bytes_accessed=N * K * x_item + K * D_pad * w_item + N * D_pad * o_item,
        transcendentals=0,
    )
    cparams = pltpu.CompilerParams(
        dimension_semantics=(
            ("parallel", "parallel") if nk == 1
            else ("parallel", "parallel", "arbitrary")
        ),
        vmem_limit_bytes=vmem_limit,
    )

    if nk == 1:
        out = pl.pallas_call(
            _kernel_single,
            out_shape=jax.ShapeDtypeStruct((N, D_pad), out_dtype),
            grid=(nj, ni),  # batch innermost -> folded weight stays VMEM-resident
            in_specs=[
                pl.BlockSpec((tm, K), lambda j, i: (i, 0)),   # x streams over batch
                pl.BlockSpec((K, td), lambda j, i: (0, j)),   # weight resident over i
            ],
            out_specs=pl.BlockSpec((tm, td), lambda j, i: (i, j)),
            compiler_params=cparams,
            cost_estimate=cost,
        )(x_flat, weff)
    else:
        out = pl.pallas_call(
            _kernel_ksplit,
            out_shape=jax.ShapeDtypeStruct((N, D_pad), out_dtype),
            grid=(nj, ni, nk),  # K-reduction innermost ("arbitrary")
            in_specs=[
                pl.BlockSpec((tm, tk), lambda j, i, k: (i, k)),
                pl.BlockSpec((tk, td), lambda j, i, k: (k, j)),
            ],
            out_specs=pl.BlockSpec((tm, td), lambda j, i, k: (i, j)),
            scratch_shapes=[pltpu.VMEM((tm, td), jnp.float32)],
            compiler_params=cparams,
            cost_estimate=cost,
        )(x_flat, weff)

    return out[:, :D_out] if D_pad != D_out else out


if __name__ == "__main__":
    # Small shapes consistent with the module's forward: (N, C, 4, 4) input.
    N = 4        # batch
    C = 8        # InputChannels
    D_out = 128  # OutputDimension (kept lane-dense; sub-128 values get padded internally)

    key = jax.random.PRNGKey(0)
    k_x, k_b, k_w = jax.random.split(key, 3)

    x = jax.random.normal(k_x, (N, C, 4, 4), dtype=jnp.float32)

    # MSRInitializer for the depthwise conv: FanIn = 1 * 4 * 4 = 16 -> std 1/4.
    basis_weight = jax.random.normal(k_b, (C, 1, 4, 4), dtype=jnp.float32) * (1.0 / 4.0)
    # MSRInitializer for the Linear: FanIn = C -> std 1/sqrt(C), no bias.
    linear_weight = jax.random.normal(k_w, (D_out, C), dtype=jnp.float32) * (
        1.0 / jnp.sqrt(C)
    )

    out = discriminative_basis(x, basis_weight, linear_weight)
    out = jax.block_until_ready(out)

    # Pure-JAX f32 reference of the exact PyTorch forward:
    # depthwise 4x4 conv on a 4x4 input == per-channel weighted spatial sum, then Linear.
    s = (x.reshape(N, C, 16) * basis_weight.reshape(C, 16)[None, :, :]).sum(-1)  # (N, C)
    ref = s @ linear_weight.T                                                    # (N, D_out)

    assert out.shape == (N, D_out)
    # Kernel runs the MXU in bf16 with f32 accumulation -> compare with bf16-level tolerance.
    assert jnp.allclose(out, ref, atol=3e-2, rtol=3e-2)

    print("KERNEL_OK")
</pallas_src>

<mosaic_0001>
module attributes {stable_mosaic.version = 11 : i64} {
  func.func @_kernel_single(%arg0: i32, %arg1: i32, %arg2: memref<4x128xf32, #tpu.memory_space<vmem>>, %arg3: memref<128x128xbf16, #tpu.memory_space<vmem>>, %arg4: memref<4x128xf32, #tpu.memory_space<vmem>>) attributes {dimension_semantics = [#tpu.dimension_semantics<parallel>, #tpu.dimension_semantics<parallel>], iteration_bounds = array<i64: 1, 1>, scalar_prefetch = 0 : i64, scratch_operands = 0 : i64, tpu.core_type = #tpu.core_type<tc>, window_params = [{transform_indices = @transform_0, window_bounds = array<i64: 4, 128>}, {transform_indices = @transform_1, window_bounds = array<i64: 128, 128>}, {transform_indices = @transform_2, window_bounds = array<i64: 4, 128>}]} {
    %c0 = arith.constant 0 : index
    %c0_0 = arith.constant 0 : index
    %0 = vector.load %arg2[%c0, %c0_0] : memref<4x128xf32, #tpu.memory_space<vmem>>, vector<4x128xf32>
    %1 = arith.truncf %0 : vector<4x128xf32> to vector<4x128xbf16>
    %c0_1 = arith.constant 0 : index
    %c0_2 = arith.constant 0 : index
    %2 = vector.load %arg3[%c0_1, %c0_2] : memref<128x128xbf16, #tpu.memory_space<vmem>>, vector<128x128xbf16>
    %cst = arith.constant dense<0.000000e+00> : vector<4x128xf32>
    %3 = tpu.matmul %1, %2, %cst {dimension_numbers = #tpu.dot_dimension_numbers<[1], [0], [0], [1], [0, 0, 1, 1], [], []>} : vector<4x128xbf16>, vector<128x128xbf16>, vector<4x128xf32> -> vector<4x128xf32>
    %c0_3 = arith.constant 0 : index
    %c0_4 = arith.constant 0 : index
    %4 = vector.load %arg4[%c0_3, %c0_4] : memref<4x128xf32, #tpu.memory_space<vmem>>, vector<4x128xf32>
    tpu.vector_store %arg4[%c0_3, %c0_4], %3 {strides = array<i32>} : memref<4x128xf32, #tpu.memory_space<vmem>>, vector<4x128xf32>,
    return
  }
  func.func @transform_0(%arg0: i32, %arg1: i32) -> (i32, i32) {
    %c0_i32 = arith.constant 0 : i32
    %c0_i32_0 = arith.constant 0 : i32
    return %arg1, %c0_i32 : i32, i32
  }
  func.func @transform_1(%arg0: i32, %arg1: i32) -> (i32, i32) {
    %c0_i32 = arith.constant 0 : i32
    %c0_i32_0 = arith.constant 0 : i32
    return %c0_i32, %arg0 : i32, i32
  }
  func.func @transform_2(%arg0: i32, %arg1: i32) -> (i32, i32) {
    %c0_i32 = arith.constant 0 : i32
    return %arg1, %arg0 : i32, i32
  }
}

</mosaic_0001>

<bundles_post_ra>
// kernel: tpu_custom_call.1
= control target key start
LH: loop header
LB: loop body
LE: loop exit
PB: predicated region body
PF: predicated region fallthrough
CT: control target
= control target key end

     0   :  { %7 = vsyncpa [#allocation3], 0  ;;  %s351_s0 = inlined_call_operand.hbm [shape: f32[4,128], index: 0, kind: input, shape index: {}]   ;;  %s352_s1 = inlined_call_operand.hbm [shape: bf16[128,128], index: 1, kind: input, shape index: {}]   ;;  %s353_s2 = inlined_call_operand.hbm [shape: f32[4,128], index: 2, kind: output, shape index: {}]  }
   0x1   :  { %8 = vsyncpa [#allocation6], 0 }
   0x2   :  { %9 = vsyncpa [#allocation4], 0  ;;  %s286_s9 = smov [#allocation2]   ;;  %s287_s11 = smov [#allocation5]  }
   0x3   :  { %s16_s10 = sshll.u32 %s286_s9, 4  ;;  %s25_s12 = sshll.u32 %s287_s11, 4  ;;  %s17_s10 = int_to_ptr.vmem [resolvable:$true] %s16_s10  ;;  %s308_s12 = int_to_ptr.vmem [resolvable:$true] %s25_s12 }
   0x4   :  { %s214_s15 = scalar_lea.hbm %s351_s0, 64 }
   0x5   :  { %p215_p0 = scmp.ne.s32.totalorder %s351_s0, %s214_s15  ;;  %p218_p1 = scmp.lt.u32.totalorder %s214_s15, %s351_s0 }
   0x7   :  { %p220_p2 = pnand %p218_p1, %p215_p0 }
   0x9   :  { %223 = shalt.err (!%p220_p2)
}
   0xa   :  { %s224_s20 = scalar_lea.vmem %s17_s10, 64  ;;  %p229_p4 = scmp.lt.s32.totalorder %s17_s10, %s17_s10 }
   0xb   :  { %p225_p3 = scmp.ne.s32.totalorder %s17_s10, %s224_s20  ;;  %p230_p5 = scmp.lt.s32.totalorder %s224_s20, %s224_s20 }
   0xd   :  { %p231_p6 = por %p230_p5, %p229_p4 }
   0xf   :  { %p232_p7 = pnand %p231_p6, %p225_p3 }
  0x11   :  { %235 = shalt.err (!%p232_p7)
}
  0x12   :  { %19 = dma.hbm_to_vmem [thread:$0]  %s351_s0, 64, %s17_s10, [#allocation3]  }
  0x13   :  { %s236_s25 = scalar_lea.hbm %s352_s1, 1024 }
  0x14   :  { %p237_p8 = scmp.ne.s32.totalorder %s352_s1, %s236_s25  ;;  %p240_p9 = scmp.lt.u32.totalorder %s236_s25, %s352_s1 }
  0x16   :  { %p242_p10 = pnand %p240_p9, %p237_p8 }
  0x18   :  { %245 = shalt.err (!%p242_p10)
}
  0x19   :  { %s246_s30 = scalar_lea.vmem %s308_s12, 1024  ;;  %p251_p12 = scmp.lt.s32.totalorder %s308_s12, %s308_s12 }
  0x1a   :  { %p247_p11 = scmp.ne.s32.totalorder %s308_s12, %s246_s30  ;;  %p252_p13 = scmp.lt.s32.totalorder %s246_s30, %s246_s30 }
  0x1c   :  { %p253_p0 = por %p252_p13, %p251_p12 }
  0x1e   :  { %p254_p1 = pnand %p253_p0, %p247_p11 }
  0x20   :  { %257 = shalt.err (!%p254_p1)
}
  0x21   :  { %s288_s0 = smov 64   ;;  %s289_s3 = smov 4  }
  0x22   :  { %31 = dma.hbm_to_vmem [thread:$0]  %s352_s1, 1024, %s308_s12, [#allocation6], %s288_s0, %s288_s0, %s289_s3  }
  0x23   :  { %280 = dma.done.wait [#allocation3], 64  }
  0x24   :  { %281 = vsyncadd [#allocation3], 4294967232 }
  0x25   :  { %282 = dma.done.wait [#allocation6], 1024  }
  0x26   :  { %283 = vsyncadd [#allocation6], 4294966272  ;;  %v290_v0 = vmov 0.0   ;;  %vm291_vm0 = vmmov 0   ;;  %v206_v1 = vld [vmem:[#allocation5] sm:$0xff]   ;;  %v207_v2 = vld [vmem:[#allocation5 + $0x8] sm:$0xff]  }
  0x27   :  { %179 = vmatprep.subr.bf16.mxu0 %v290_v0  ;;  %195 = vmatprep.mubr.msk.bf16.mxu0 %vm291_vm0, %v290_v0  ;;  %v208_v3 = vld [vmem:[#allocation5 + $0x10] sm:$0xff]   ;;  %v209_v4 = vld [vmem:[#allocation5 + $0x18] sm:$0xff]   ;;  %v210_v5 = vld [vmem:[#allocation5 + $0x20] sm:$0xff]   ;;  %s292_s1 = smov [#allocation7]  }
  0x28   :  { %180 = vmatpush3.bf16.msra.mxu0 %v206_v1  ;;  %v211_v6 = vld [vmem:[#allocation5 + $0x28] sm:$0xff]   ;;  %v212_v7 = vld [vmem:[#allocation5 + $0x30] sm:$0xff]   ;;  %v213_v8 = vld [vmem:[#allocation5 + $0x38] sm:$0xff]   ;;  %s152_s6 = sshll.u32 %s292_s1, 4  ;;  %s153_s6 = int_to_ptr.vmem [resolvable:$true] %s152_s6 }
  0x29   :  { %181 = vmatprep.subr.bf16.mxu0 %v290_v0  ;;  %v39_v9 = vld [vmem:[#allocation2] sm:$0xf]  ;;  %s258_s7 = scalar_lea.vmem %s153_s6, 64  ;;  %p263_p3 = scmp.lt.s32.totalorder %s153_s6, %s153_s6 }
  0x2a   :  { %v40_v10 = vpack.c.bf16 %v39_v9, %v39_v9  ;;  %p259_p2 = scmp.ne.s32.totalorder %s153_s6, %s258_s7  ;;  %p264_p4 = scmp.lt.s32.totalorder %s258_s7, %s258_s7 }
  0x2c   :  { %182 = vmatpush3.bf16.msra.mxu0 %v207_v2  ;;  %p265_p5 = por %p264_p4, %p263_p3 }
  0x2d   :  { %183 = vmatprep.subr.bf16.mxu0 %v290_v0 }
  0x2e   :  { %p266_p6 = pnand %p265_p5, %p259_p2 }
  0x30   :  { %184 = vmatpush3.bf16.msra.mxu0 %v208_v3 }
  0x31   :  { %185 = vmatprep.subr.bf16.mxu0 %v290_v0 }
  0x34   :  { %186 = vmatpush3.bf16.msra.mxu0 %v209_v4 }
  0x35   :  { %187 = vmatprep.subr.bf16.mxu0 %v290_v0 }
  0x38   :  { %188 = vmatpush3.bf16.msra.mxu0 %v210_v5 }
  0x39   :  { %189 = vmatprep.subr.bf16.mxu0 %v290_v0 }
  0x3c   :  { %190 = vmatpush3.bf16.msra.mxu0 %v211_v6 }
  0x3d   :  { %191 = vmatprep.subr.bf16.mxu0 %v290_v0 }
  0x40   :  { %192 = vmatpush3.bf16.msra.mxu0 %v212_v7 }
  0x41   :  { %193 = vmatprep.subr.bf16.mxu0 %v290_v0 }
  0x44   :  { %194 = vmatpush3.bf16.msra.mxu0 %v213_v8 }
  0x47   :  { %196 = vmatmul.mubr.bf16.vlgmr.msra.gmra.mrb[0].mxu0 %v40_v10 }
 0x11a   :  { %v139_v11 = vpop.f32.mrb[0].mxu0 }
 0x11b   :  { %145 = vst [vmem:[#allocation7] sm:$0xf] %v139_v11  ;;  %v197_v12 = vpop.f32.mrb[1].mxu0 }
 0x11c   :  { %v142_v13 = vpop.f32.mrb[2].mxu0 }
 0x11d   :  { %269 = shalt.err (!%p266_p6)
}
 0x11e   :  { %s270_s10 = scalar_lea.hbm %s353_s2, 64 }
 0x11f   :  { %p271_p7 = scmp.ne.s32.totalorder %s353_s2, %s270_s10  ;;  %p274_p8 = scmp.lt.u32.totalorder %s270_s10, %s353_s2 }
 0x121   :  { %p276_p9 = pnand %p274_p8, %p271_p7 }
 0x123   :  { %279 = shalt.err (!%p276_p9)
}
 0x124   :  { %155 = dma.vmem_to_hbm [thread:$0]  %s153_s6, 64, %s353_s2, [#allocation4]   ;;  %v198_v14 = vpop.f32.mrb[3].mxu0 }
 0x125   :  { %284 = dma.done.wait [#allocation4], 64  }
 0x126   :  { %285 = vsyncadd [#allocation4], 4294967232 }
 0x127   :  { %159 = vsyncpa [#allocation3], 1 }
 0x128   :  { %160 = vsyncpa [#allocation6], 1 }
 0x129   :  { %161 = vsyncpa [#allocation4], 1 }

</bundles_post_ra>
